<compile_context>
chip_gen: v7x
topology: tpu7x:2x2x1
jax: 0.10.0
libtpu: 0.0.40
codegen_flags: <defaults>
</compile_context>

<pallas_src>
import functools

import jax
import jax.numpy as jnp
from jax.experimental import pallas as pl
from jax.experimental.pallas import tpu as pltpu


# ----------------------------- Pallas kernel --------------------------------

def _fused_stem_pool_fc_kernel(hw_true, ts,
                               patch_ref, w_ref, b_ref, fcw_ref, fcb_ref,
                               pooled_ref, out_ref, acc_ref):
    """One (image, spatial-tile) grid step.

    conv-as-matmul tile (bf16 in / f32 accumulate on the MXU) + single-transcendental
    swish (f32), partial global-average-pool accumulation into a VMEM f32 scratch,
    and at the last spatial tile the tiny (1, Cp) @ (Cp, NCp) classifier FC.
    """
    j = pl.program_id(1)
    last = pl.num_programs(1) - 1

    @pl.when(j == 0)
    def _init():
        acc_ref[...] = jnp.zeros_like(acc_ref)

    x = patch_ref[0]                                             # (TS, Kp) bf16
    y = jnp.dot(x, w_ref[...], preferred_element_type=jnp.float32) + b_ref[...]
    # swish(y) = y * sigmoid(y) = 0.5 * y * (1 + tanh(y/2)) -> one EUP op per vreg.
    y = 0.5 * y * (1.0 + jnp.tanh(0.5 * y))

    if hw_true % ts != 0:
        # Only the final spatial tile contains zero-padded rows; gate the mask so
        # the iota/compare/select is not VPU filler on every other tile.
        @pl.when(j != last)
        def _accumulate_full():
            acc_ref[...] += jnp.sum(y, axis=0, keepdims=True)

        @pl.when(j == last)
        def _accumulate_masked():
            row = j * ts + jax.lax.broadcasted_iota(jnp.int32, y.shape, 0)
            ym = jnp.where(row < hw_true, y, 0.0)
            acc_ref[...] += jnp.sum(ym, axis=0, keepdims=True)
    else:
        acc_ref[...] += jnp.sum(y, axis=0, keepdims=True)        # (1, Cp) f32

    @pl.when(j == last)
    def _finalize():
        pooled = acc_ref[...] * (1.0 / hw_true)                  # (1, Cp)
        pooled_ref[...] = pooled[None]                           # (1, 1, Cp)
        logits = jnp.dot(pooled, fcw_ref[...],
                         preferred_element_type=jnp.float32) + fcb_ref[...]
        out_ref[...] = logits[None]                              # (1, 1, NCp)


# ------------------------------ glue (plain JAX) ----------------------------

def init_params(key, cin=3, cout=32, num_classes=2):
    """Deterministic synthetic parameters (this is not a checkpoint load)."""
    k1, k2, k3, k4 = jax.random.split(key, 4)
    return {
        "conv_w": 0.1 * jax.random.normal(k1, (3, 3, cin, cout), jnp.float32),
        "conv_b": 0.1 * jax.random.normal(k2, (1, cout), jnp.float32),
        "fc_w":   0.1 * jax.random.normal(k3, (cout, num_classes), jnp.float32),
        "fc_b":   0.1 * jax.random.normal(k4, (1, num_classes), jnp.float32),
    }


def _round_up(x, m):
    return (x + m - 1) // m * m


def _extract_patches_nhwc(x_nhwc, kh=3, kw=3, stride=2):
    """im2col for a 3x3 stride-2 'SAME' conv (glue; matmul happens in the kernel).

    TODO(synk): for the real backbone this should move in-kernel (shifted matmuls /
    manual DMA) so only the raw image crosses HBM; here allow_input_fusion lets XLA
    fuse this producer into the pallas_call instead of round-tripping it.
    """
    n, h, w, c = x_nhwc.shape
    ho, wo = h // stride, w // stride
    # TF-style SAME padding for even H/W, k=3, s=2: pad (0, 1) on each spatial dim.
    xp = jnp.pad(x_nhwc, ((0, 0), (0, 1), (0, 1), (0, 0)))
    taps = []
    for i in range(kh):
        for j in range(kw):
            taps.append(xp[:, i:i + stride * ho:stride, j:j + stride * wo:stride, :])
    patches = jnp.concatenate(taps, axis=-1)                     # (N, Ho, Wo, KH*KW*Cin)
    return patches.reshape(n, ho * wo, kh * kw * c), (n, ho, wo)


@functools.partial(jax.jit, static_argnames=("feature_extract",))
def doge_net_forward(img_nchw, params, feature_extract=False):
    x = jnp.transpose(img_nchw, (0, 2, 3, 1)).astype(jnp.float32)   # NCHW -> NHWC
    patches, (n, ho, wo) = _extract_patches_nhwc(x)                  # (N, Ho*Wo, K)
    hw = ho * wo
    k = patches.shape[-1]
    cout = params["conv_w"].shape[-1]
    nc = params["fc_w"].shape[-1]

    # Sublane/packing-friendly contraction dim: pad K (=27) up to 32.
    kp = _round_up(k, 32)
    # Lane-dense feature / logit widths: pad Cout and num_classes up to 128 so every
    # y / acc / pooled / logits vreg uses all 128 lanes and stores are unmasked.
    cout_p = _round_up(cout, 128)
    nc_p = _round_up(nc, 128)
    # Spatial tile: multiple of 16 rows (bf16 sublane packing), capped at 4096 so the
    # grid isn't step-overhead-bound at real image sizes; blocks stay well under VMEM
    # (a (4096, 32) bf16 patch tile is 256 KB, the f32 intermediate ~2 MB).
    ts = max(16, min(4096, _round_up(hw, 16)))
    hw_pad = _round_up(hw, ts)
    num_tiles = hw_pad // ts

    patches = jnp.pad(patches, ((0, 0), (0, hw_pad - hw), (0, kp - k)))
    patches = patches.astype(jnp.bfloat16)                       # halve HBM traffic

    w_mat = params["conv_w"].reshape(k, cout)
    w_mat = jnp.pad(w_mat, ((0, kp - k), (0, cout_p - cout))).astype(jnp.bfloat16)
    b = jnp.pad(params["conv_b"], ((0, 0), (0, cout_p - cout))).astype(jnp.float32)
    fc_w = jnp.pad(params["fc_w"],
                   ((0, cout_p - cout), (0, nc_p - nc))).astype(jnp.float32)
    fc_b = jnp.pad(params["fc_b"], ((0, 0), (0, nc_p - nc))).astype(jnp.float32)
    # Padded Cout columns have zero weight+bias -> swish(0)=0 -> pool/FC unchanged;
    # padded FC columns have zero weight+bias -> sliced away below.

    bytes_accessed = (patches.size * 2 + w_mat.size * 2
                      + (b.size + fc_w.size + fc_b.size) * 4
                      + (n * cout_p + n * nc_p) * 4)
    cost = pl.CostEstimate(
        flops=2 * n * hw_pad * kp * cout_p + 2 * n * cout_p * nc_p,
        transcendentals=n * hw_pad * cout_p,
        bytes_accessed=bytes_accessed,
    )

    kernel = functools.partial(_fused_stem_pool_fc_kernel, hw, ts)

    pooled3, out3 = pl.pallas_call(
        kernel,
        out_shape=(
            jax.ShapeDtypeStruct((n, 1, cout_p), jnp.float32),
            jax.ShapeDtypeStruct((n, 1, nc_p), jnp.float32),
        ),
        grid=(n, num_tiles),
        in_specs=[
            pl.BlockSpec((1, ts, kp), lambda i, j: (i, j, 0)),     # streamed patch tiles
            pl.BlockSpec((kp, cout_p), lambda i, j: (0, 0)),       # conv weight (resident)
            pl.BlockSpec((1, cout_p), lambda i, j: (0, 0)),        # conv bias
            pl.BlockSpec((cout_p, nc_p), lambda i, j: (0, 0)),     # fc weight
            pl.BlockSpec((1, nc_p), lambda i, j: (0, 0)),          # fc bias
        ],
        out_specs=(
            pl.BlockSpec((1, 1, cout_p), lambda i, j: (i, 0, 0)),  # pooled features
            pl.BlockSpec((1, 1, nc_p), lambda i, j: (i, 0, 0)),    # logits
        ),
        scratch_shapes=[pltpu.VMEM((1, cout_p), jnp.float32)],     # pool accumulator
        compiler_params=pltpu.CompilerParams(
            dimension_semantics=("parallel", "arbitrary"),
            vmem_limit_bytes=32 * 1024 * 1024,
            # Let XLA fuse the im2col/pad/cast producer into the kernel's patch input
            # instead of materializing the (~2.7x image size) patch tensor in HBM.
            allow_input_fusion=[True, False, False, False, False],
        ),
        cost_estimate=cost,
    )(patches, w_mat, b, fc_w, fc_b)

    pooled = pooled3.reshape(n, cout_p)[:, :cout]
    out = out3.reshape(n, nc_p)[:, :nc]
    return pooled if feature_extract else out


def _reference_forward(img_nchw, params, feature_extract=False):
    """Pure-JAX reference with matching (bf16-matmul / f32-accumulate) numerics."""
    x = jnp.transpose(img_nchw, (0, 2, 3, 1)).astype(jnp.float32)
    patches, (n, ho, wo) = _extract_patches_nhwc(x)
    cout = params["conv_w"].shape[-1]
    w = params["conv_w"].reshape(-1, cout)
    y = jnp.dot(patches.astype(jnp.bfloat16), w.astype(jnp.bfloat16),
                preferred_element_type=jnp.float32) + params["conv_b"]
    y = y * jax.nn.sigmoid(y)
    pooled = y.mean(axis=1)                                      # (N, Cout)
    out = pooled @ params["fc_w"] + params["fc_b"]
    return pooled if feature_extract else out


# ----------------------------------- main ------------------------------------

if __name__ == "__main__":
    key = jax.random.PRNGKey(0)
    k_img, k_params = jax.random.split(key)

    # Small NCHW image batch (PyTorch convention), like the module's `img` input.
    img = jax.random.normal(k_img, (2, 3, 16, 16), jnp.float32)
    params = init_params(k_params, cin=3, cout=32, num_classes=2)

    logits = jax.block_until_ready(doge_net_forward(img, params))
    feats = jax.block_until_ready(doge_net_forward(img, params, feature_extract=True))

    ref_logits = _reference_forward(img, params)
    ref_feats = _reference_forward(img, params, feature_extract=True)

    assert logits.shape == (2, 2) and feats.shape == (2, 32)
    assert jnp.allclose(logits, ref_logits, rtol=1e-4, atol=1e-4)
    assert jnp.allclose(feats, ref_feats, rtol=1e-4, atol=1e-4)

    print("KERNEL_OK")
</pallas_src>

<mosaic_0001>
module attributes {stable_mosaic.version = 11 : i64} {
  func.func @_fused_stem_pool_fc_kernel(%arg0: i32, %arg1: i32, %arg2: memref<1x64x32xbf16, #tpu.memory_space<vmem>>, %arg3: memref<32x128xbf16, #tpu.memory_space<vmem>>, %arg4: memref<1x128xf32, #tpu.memory_space<vmem>>, %arg5: memref<128x128xf32, #tpu.memory_space<vmem>>, %arg6: memref<1x128xf32, #tpu.memory_space<vmem>>, %arg7: memref<1x1x128xf32, #tpu.memory_space<vmem>>, %arg8: memref<1x1x128xf32, #tpu.memory_space<vmem>>, %arg9: memref<1x128xf32, #tpu.memory_space<vmem>>) attributes {dimension_semantics = [#tpu.dimension_semantics<parallel>, #tpu.dimension_semantics<arbitrary>], iteration_bounds = array<i64: 2, 1>, scalar_prefetch = 0 : i64, scratch_operands = 1 : i64, tpu.core_type = #tpu.core_type<tc>, window_params = [{transform_indices = @transform_0, window_bounds = array<i64: 1, 64, 32>}, {pipeline_mode = #tpu.pipeline_mode<synchronous>, transform_indices = @transform_1, window_bounds = array<i64: 32, 128>}, {pipeline_mode = #tpu.pipeline_mode<synchronous>, transform_indices = @transform_2, window_bounds = array<i64: 1, 128>}, {pipeline_mode = #tpu.pipeline_mode<synchronous>, transform_indices = @transform_3, window_bounds = array<i64: 128, 128>}, {pipeline_mode = #tpu.pipeline_mode<synchronous>, transform_indices = @transform_4, window_bounds = array<i64: 1, 128>}, {transform_indices = @transform_5, window_bounds = array<i64: 1, 1, 128>}, {transform_indices = @transform_6, window_bounds = array<i64: 1, 1, 128>}]} {
    %c0_i32 = arith.constant 0 : i32
    %0 = arith.cmpi eq, %arg1, %c0_i32 : i32
    %1 = arith.extui %0 : i1 to i32
    %c0_i32_0 = arith.constant 0 : i32
    %2 = arith.cmpi ne, %1, %c0_i32_0 : i32
    scf.if %2 {
      %cst_17 = arith.constant 0.000000e+00 : f32
      %26 = vector.broadcast %cst_17 : f32 to vector<1x128xf32>
      %c0_18 = arith.constant 0 : index
      %c0_19 = arith.constant 0 : index
      %27 = vector.load %arg9[%c0_18, %c0_19] : memref<1x128xf32, #tpu.memory_space<vmem>>, vector<1x128xf32>
      tpu.vector_store %arg9[%c0_18, %c0_19], %26 {strides = array<i32>} : memref<1x128xf32, #tpu.memory_space<vmem>>, vector<1x128xf32>,
    } else {
    }
    %c0 = arith.constant 0 : index
    %c0_1 = arith.constant 0 : index
    %c0_2 = arith.constant 0 : index
    %3 = vector.load %arg2[%c0, %c0_1, %c0_2] : memref<1x64x32xbf16, #tpu.memory_space<vmem>>, vector<1x64x32xbf16>
    %4 = vector.shape_cast %3 : vector<1x64x32xbf16> to vector<64x32xbf16>
    %c0_3 = arith.constant 0 : index
    %c0_4 = arith.constant 0 : index
    %5 = vector.load %arg3[%c0_3, %c0_4] : memref<32x128xbf16, #tpu.memory_space<vmem>>, vector<32x128xbf16>
    %cst = arith.constant dense<0.000000e+00> : vector<64x128xf32>
    %6 = tpu.matmul %4, %5, %cst {dimension_numbers = #tpu.dot_dimension_numbers<[1], [0], [0], [1], [0, 0, 1, 1], [], []>} : vector<64x32xbf16>, vector<32x128xbf16>, vector<64x128xf32> -> vector<64x128xf32>
    %c0_5 = arith.constant 0 : index
    %c0_6 = arith.constant 0 : index
    %7 = vector.load %arg4[%c0_5, %c0_6] : memref<1x128xf32, #tpu.memory_space<vmem>>, vector<1x128xf32>
    %8 = vector.broadcast %7 : vector<1x128xf32> to vector<64x128xf32>
    %9 = arith.addf %6, %8 : vector<64x128xf32>
    %cst_7 = arith.constant 5.000000e-01 : f32
    %10 = vector.broadcast %cst_7 : f32 to vector<64x128xf32>
    %11 = arith.mulf %10, %9 : vector<64x128xf32>
    %cst_8 = arith.constant 5.000000e-01 : f32
    %12 = vector.broadcast %cst_8 : f32 to vector<64x128xf32>
    %13 = arith.mulf %12, %9 : vector<64x128xf32>
    %14 = math.tanh %13 : vector<64x128xf32>
    %cst_9 = arith.constant 1.000000e+00 : f32
    %15 = vector.broadcast %cst_9 : f32 to vector<64x128xf32>
    %16 = arith.addf %15, %14 : vector<64x128xf32>
    %17 = arith.mulf %11, %16 : vector<64x128xf32>
    %c0_10 = arith.constant 0 : index
    %c0_11 = arith.constant 0 : index
    %18 = vector.load %arg9[%c0_10, %c0_11] : memref<1x128xf32, #tpu.memory_space<vmem>>, vector<1x128xf32>
    %cst_12 = arith.constant dense<0.000000e+00> : vector<128xf32>
    %19 = vector.multi_reduction <add>, %17, %cst_12 [0] : vector<64x128xf32> to vector<128xf32>
    %20 = vector.shape_cast %19 : vector<128xf32> to vector<1x128xf32>
    %21 = arith.addf %18, %20 : vector<1x128xf32>
    %c0_13 = arith.constant 0 : index
    %c0_14 = arith.constant 0 : index
    %22 = vector.load %arg9[%c0_13, %c0_14] : memref<1x128xf32, #tpu.memory_space<vmem>>, vector<1x128xf32>
    tpu.vector_store %arg9[%c0_13, %c0_14], %21 {strides = array<i32>} : memref<1x128xf32, #tpu.memory_space<vmem>>, vector<1x128xf32>,
    %c0_i32_15 = arith.constant 0 : i32
    %23 = arith.cmpi eq, %arg1, %c0_i32_15 : i32
    %24 = arith.extui %23 : i1 to i32
    %c0_i32_16 = arith.constant 0 : i32
    %25 = arith.cmpi ne, %24, %c0_i32_16 : i32
    scf.if %25 {
      %c0_17 = arith.constant 0 : index
      %c0_18 = arith.constant 0 : index
      %26 = vector.load %arg9[%c0_17, %c0_18] : memref<1x128xf32, #tpu.memory_space<vmem>>, vector<1x128xf32>
      %cst_19 = arith.constant 1.562500e-02 : f32
      %27 = vector.broadcast %cst_19 : f32 to vector<1x128xf32>
      %28 = arith.mulf %26, %27 : vector<1x128xf32>
      %29 = vector.shape_cast %28 : vector<1x128xf32> to vector<1x1x128xf32>
      %c0_20 = arith.constant 0 : index
      %c0_21 = arith.constant 0 : index
      %c0_22 = arith.constant 0 : index
      %30 = vector.load %arg7[%c0_20, %c0_21, %c0_22] : memref<1x1x128xf32, #tpu.memory_space<vmem>>, vector<1x1x128xf32>
      tpu.vector_store %arg7[%c0_20, %c0_21, %c0_22], %29 {strides = array<i32>} : memref<1x1x128xf32, #tpu.memory_space<vmem>>, vector<1x1x128xf32>,
      %c0_23 = arith.constant 0 : index
      %c0_24 = arith.constant 0 : index
      %31 = vector.load %arg5[%c0_23, %c0_24] : memref<128x128xf32, #tpu.memory_space<vmem>>, vector<128x128xf32>
      %cst_25 = arith.constant dense<0.000000e+00> : vector<1x128xf32>
      %32 = tpu.matmul %28, %31, %cst_25 {dimension_numbers = #tpu.dot_dimension_numbers<[1], [0], [0], [1], [0, 0, 1, 1], [], []>} : vector<1x128xf32>, vector<128x128xf32>, vector<1x128xf32> -> vector<1x128xf32>
      %c0_26 = arith.constant 0 : index
      %c0_27 = arith.constant 0 : index
      %33 = vector.load %arg6[%c0_26, %c0_27] : memref<1x128xf32, #tpu.memory_space<vmem>>, vector<1x128xf32>
      %34 = arith.addf %32, %33 : vector<1x128xf32>
      %35 = vector.shape_cast %34 : vector<1x128xf32> to vector<1x1x128xf32>
      %c0_28 = arith.constant 0 : index
      %c0_29 = arith.constant 0 : index
      %c0_30 = arith.constant 0 : index
      %36 = vector.load %arg8[%c0_28, %c0_29, %c0_30] : memref<1x1x128xf32, #tpu.memory_space<vmem>>, vector<1x1x128xf32>
      tpu.vector_store %arg8[%c0_28, %c0_29, %c0_30], %35 {strides = array<i32>} : memref<1x1x128xf32, #tpu.memory_space<vmem>>, vector<1x1x128xf32>,
    } else {
    }
    return
  }
  func.func @transform_0(%arg0: i32, %arg1: i32) -> (i32, i32, i32) {
    %c0_i32 = arith.constant 0 : i32
    %c0_i32_0 = arith.constant 0 : i32
    return %arg0, %arg1, %c0_i32 : i32, i32, i32
  }
  func.func @transform_1(%arg0: i32, %arg1: i32) -> (i32, i32) {
    %c0_i32 = arith.constant 0 : i32
    %c0_i32_0 = arith.constant 0 : i32
    %c0_i32_1 = arith.constant 0 : i32
    return %c0_i32, %c0_i32_0 : i32, i32
  }
  func.func @transform_2(%arg0: i32, %arg1: i32) -> (i32, i32) {
    %c0_i32 = arith.constant 0 : i32
    %c0_i32_0 = arith.constant 0 : i32
    %c0_i32_1 = arith.constant 0 : i32
    return %c0_i32, %c0_i32_0 : i32, i32
  }
  func.func @transform_3(%arg0: i32, %arg1: i32) -> (i32, i32) {
    %c0_i32 = arith.constant 0 : i32
    %c0_i32_0 = arith.constant 0 : i32
    %c0_i32_1 = arith.constant 0 : i32
    return %c0_i32, %c0_i32_0 : i32, i32
  }
  func.func @transform_4(%arg0: i32, %arg1: i32) -> (i32, i32) {
    %c0_i32 = arith.constant 0 : i32
    %c0_i32_0 = arith.constant 0 : i32
    %c0_i32_1 = arith.constant 0 : i32
    return %c0_i32, %c0_i32_0 : i32, i32
  }
  func.func @transform_5(%arg0: i32, %arg1: i32) -> (i32, i32, i32) {
    %c0_i32 = arith.constant 0 : i32
    %c0_i32_0 = arith.constant 0 : i32
    %c0_i32_1 = arith.constant 0 : i32
    return %arg0, %c0_i32, %c0_i32_0 : i32, i32, i32
  }
  func.func @transform_6(%arg0: i32, %arg1: i32) -> (i32, i32, i32) {
    %c0_i32 = arith.constant 0 : i32
    %c0_i32_0 = arith.constant 0 : i32
    %c0_i32_1 = arith.constant 0 : i32
    return %arg0, %c0_i32, %c0_i32_0 : i32, i32, i32
  }
}

</mosaic_0001>

<bundles_post_ra>
// kernel: doge_net_forward.2
= control target key start
LH: loop header
LB: loop body
LE: loop exit
PB: predicated region body
PF: predicated region fallthrough
CT: control target
= control target key end

     0   :  { %s1472_s0 = inlined_call_operand.vmem [shape: bf16[32,128], index: 0, kind: input, shape index: {}]   ;;  %s1473_s1 = inlined_call_operand.vmem [shape: f32[1,128], index: 1, kind: input, shape index: {}]   ;;  %s1474_s2 = inlined_call_operand.vmem [shape: f32[128,128], index: 2, kind: input, shape index: {}]   ;;  %s1475_s3 = inlined_call_operand.vmem [shape: f32[1,128], index: 3, kind: input, shape index: {}]   ;;  %s1476_s4 = inlined_call_operand.vmem [shape: bf16[2,64,27], index: 4, kind: input, shape index: {}]   ;;  %s1477_s5 = inlined_call_operand.<no memory space> [shape: bf16[], index: 5, kind: input, shape index: {}]   ;;  %s1478_s6 = inlined_call_operand.hbm [shape: f32[2,1,128], index: 6, kind: output, shape index: {0}]   ;;  %s1479_s7 = inlined_call_operand.hbm [shape: f32[2,1,128], index: 7, kind: output, shape index: {1}]  }
   0x1   :  { %v13_v0 = vstv %s1477_s5 }
   0x2   :  { %v1240_v1 = vunpack.i.l.bf16 %v13_v0 }
   0x3   :  { %18 = vsyncpa [#allocation9], 0 }
   0x4   :  { %20 = vsyncpa [#allocation9 + $0x1], 0 }
   0x5   :  { %21 = vsyncpa [#allocation11], 0 }
   0x6   :  { %23 = vsyncpa [#allocation11 + $0x1], 0  ;;  %s1242_s26 = smov 0   ;;  %s1244_s27 = smov 0  }
   0x7   :  { %s1246_s28 = smov 0   ;;  %s1248_s29 = smov 0  }
   0x8   :  { %s1250_s30 = smov 0   ;;  %s1252_s8 = smov 0  }
   0x9 LB: > { %s871_s5 = sadd.s32 4294967295, %s1190_s8   ;;  %s872_s9 = sadd.s32 4294967294, %s1190_s8   ;;  %s1190_s8 = sphi %s1252_s8, %s29_s8   ;;  %s1186_s30 = sphi %s1250_s30, %s1486_s30   ;;  %s1182_s29 = sphi %s1248_s29, %s1485_s29   ;;  %s1178_s28 = sphi %s1246_s28, %s1484_s28   ;;  %s1174_s27 = sphi %s1244_s27, %s1483_s27   ;;  %s1170_s26 = sphi %s1242_s26, %s1482_s26  }
   0xa   : > { %s41_s10 = sadd.s32 1, %s1186_s30  ;;  %s160_s11 = sadd.s32 1, %s1178_s28 }
   0xb   : > { %p43_p0 = scmp.ge.s32.totalorder %s41_s10, 2  ;;  %p170_p1 = scmp.ne.s32.totalorder %s1178_s28, %s1174_s27 }
   0xc   : > { %p171_p2 = scmp.eq.s32.totalorder %s871_s5, 1  ;;  %p176_p3 = scmp.ne.s32.totalorder %s1174_s27, %s1170_s26 }
   0xd   : > { %s1488_s10 = smov (%p43_p0, %s41_s10), 0  ;;  %p177_p5 = scmp.eq.s32.totalorder %s872_s9, 1 }
   0xe   : > { %p1282_p4 = por %p171_p2, %p170_p1  ;;  %s157_s13 = ssub.s32 %s1186_s30, %s1488_s10 }
   0xf   : > { %p875_p6 = scmp.ge.s32.totalorder %s1190_s8, 1  ;;  %p158_p7 = scmp.eq.s32.totalorder %s157_s13, 0 }
  0x10   : > { %p1289_p8 = por %p177_p5, %p176_p3  ;;  %p246_p9 = scmp.lt.s32.totalorder %s1190_s8, 3 }
  0x11   : > { %s1295_s15 = scalar_select %p158_p7, %s1178_s28, %s160_s11  }
  0x12   : > { %p247_p10 = pnand %p875_p6, %p246_p9 }
  0x14   : > { %250 = sbr.rel (%p247_p10) target bundleno = 548 (0x224), region = 40 }
  0x1b   : > { %v1058_v2 = vld [vmem:[%s1472_s0] sm:$0xff]   ;;  %p284_p11 = scmp.lt.s32.totalorder %s1182_s29, 1  ;;  %v305_v3 = vlaneseq  ;;  %v1059_v4 = vld [vmem:[%s1472_s0 + $0x8] sm:$0xff]   ;;  %v1192_v6 = vmov 0.0   ;;  %vm524_vm1 = vcmask 261120   ;;  %v1193_v42 = vmov 0.0|0.0  }
  0x1c   : > { %924 = vmatprep.subr.bf16.mxu0 %v1058_v2  ;;  %472 = vst [vmem:[#allocation2] sm:$0x1] %v1192_v6  ;;  %v656_v39 = vld [vmem:[%s1474_s2] sm:$0xff]  ;;  %v657_v40 = vld [vmem:[%s1474_s2 + $0x8] sm:$0xff]  ;;  %971 = vmatprep.subr.bf16.mxu1 %v1193_v42  ;;  %v658_v43 = vld [vmem:[%s1474_s2 + $0x10] sm:$0xff]  ;;  %vm1194_vm2 = vmmov 0  }
  0x1d   : > { %s285_s20 = scalar_select %p284_p11, %s1182_s29, 1  ;;  %v306_v5 = vand.u32 127, %v305_v3  ;;  %925 = vmatpush3.bf16.msra.mxu0 %v1058_v2  ;;  %v972_v41 = vpack.c.bf16 %v657_v40, %v656_v39  ;;  %v659_v44 = vld [vmem:[%s1474_s2 + $0x18] sm:$0xff]  ;;  %v660_v46 = vld [vmem:[%s1474_s2 + $0x20] sm:$0xff]  ;;  %v661_v47 = vld [vmem:[%s1474_s2 + $0x28] sm:$0xff]  ;;  %968 = vmatprep.mubr.msk.f32.mxu1 %vm1194_vm2, %v1192_v6 }
  0x1e   : > { %926 = vmatprep.subr.bf16.mxu0 %v1059_v4  ;;  %v975_v45 = vpack.c.bf16 %v659_v44, %v658_v43  ;;  %v978_v48 = vpack.c.bf16 %v661_v47, %v660_v46  ;;  %v662_v49 = vld [vmem:[%s1474_s2 + $0x30] sm:$0xff]  ;;  %v663_v50 = vld [vmem:[%s1474_s2 + $0x38] sm:$0xff]  ;;  %v664_v52 = vld [vmem:[%s1474_s2 + $0x40] sm:$0xff]  ;;  %s1386_s17 = sand.u32 1, %s1174_s27   ;;  %s896_s19 = sshll.u32 %s1182_s29, 4 }
  0x1f   : > { %s900_s21 = sshll.u32 %s285_s20, 5  ;;  %vm308_vm0 = vcmp.lt.s32.totalorder %v306_v5, 27  ;;  %973 = vmatpush3.bf16.msra.mxu1 %v972_v41  ;;  %v981_v51 = vpack.c.bf16 %v663_v50, %v662_v49  ;;  %v665_v53 = vld [vmem:[%s1474_s2 + $0x48] sm:$0xff]  ;;  %v666_v55 = vld [vmem:[%s1474_s2 + $0x50] sm:$0xff]  ;;  %v667_v56 = vld [vmem:[%s1474_s2 + $0x58] sm:$0xff]  ;;  %s276_s18 = scalar_lea.vmem [#allocation8], %s1386_s17 }
  0x20   : > { %s291_s24 = scalar_lea.vmem %s1476_s4, %s900_s21  ;;  %974 = vmatprep.subr.bf16.mxu1 %v1193_v42  ;;  %v984_v54 = vpack.c.bf16 %v665_v53, %v664_v52  ;;  %v987_v57 = vpack.c.bf16 %v667_v56, %v666_v55  ;;  %v668_v58 = vld [vmem:[%s1474_s2 + $0x60] sm:$0xff]  ;;  %v669_v59 = vld [vmem:[%s1474_s2 + $0x68] sm:$0xff]  ;;  %v670_v60 = vld [vmem:[%s1474_s2 + $0x70] sm:$0xff]  ;;  %s761_s20 = sshll.u32 %s276_s18, 4  ;;  %s762_s20 = int_to_ptr.vmem [resolvable:$true] %s761_s20 }
  0x21   : > { %v302_v7 = vld [vmem:[%s291_s24] sm:$0xff]   ;;  %v879_v8 = vld [vmem:[%s291_s24 + $0x8] sm:$0xff]   ;;  %v881_v9 = vld [vmem:[%s291_s24 + $0x10] sm:$0xff]   ;;  %927 = vmatpush3.bf16.msra.mxu0 %v1059_v4  ;;  %v990_v61 = vpack.c.bf16 %v669_v59, %v668_v58  ;;  %s1395_s23 = scalar_lea.hbm %s1478_s6, %s896_s19  ;;  %s1080_s25 = scalar_lea.vmem %s762_s20, 16 }
  0x22   : > { %v303_v10 = vunpack.c.l.bf16 %v302_v7  ;;  %v324_v11 = vunpack.c.h.bf16 %v302_v7  ;;  %v346_v12 = vunpack.c.l.bf16 %v879_v8  ;;  %v368_v13 = vunpack.c.h.bf16 %v879_v8  ;;  %v883_v14 = vld [vmem:[%s291_s24 + $0x18] sm:$0xff]   ;;  %v885_v0 = vld [vmem:[%s1473_s1] ss:$0 sm:$0xff]  ;;  %s745_s24 = scalar_lea.sflag [#allocation9], %s1386_s17  ;;  %p1081_p12 = scmp.ne.s32.totalorder %s762_s20, %s1080_s25 }
  0x23   : > { %v390_v15 = vunpack.c.l.bf16 %v881_v9  ;;  %v412_v16 = vunpack.c.h.bf16 %v881_v9  ;;  %v434_v17 = vunpack.c.l.bf16 %v883_v14  ;;  %v456_v18 = vunpack.c.h.bf16 %v883_v14  ;;  %976 = vmatpush3.bf16.msra.mxu1 %v975_v45  ;;  %v671_v62 = vld [vmem:[%s1474_s2 + $0x78] sm:$0xff]  ;;  %s1195_s5 = smov [#allocation8]  }
  0x24   : > { %v309_v19 = vsel %vm308_vm0, %v303_v10, %v1240_v1  ;;  %v330_v20 = vsel %vm308_vm0, %v324_v11, %v1240_v1  ;;  %v352_v21 = vsel %vm308_vm0, %v346_v12, %v1240_v1  ;;  %v374_v22 = vsel %vm308_vm0, %v368_v13, %v1240_v1  ;;  %977 = vmatprep.subr.bf16.mxu1 %v1193_v42  ;;  %p1082_p13 = pnand %p1081_p12, %p1282_p4  ;;  %s1084_s9 = sshll.u32 %s1195_s5, 4  ;;  %s1085_s9 = int_to_ptr.vmem [resolvable:$false] %s1084_s9 }
  0x25   : > { %v310_v23 = vpack.c.bf16 %v1192_v6, %v309_v19  ;;  %v332_v24 = vpack.c.bf16 %v1192_v6, %v330_v20  ;;  %v354_v25 = vpack.c.bf16 %v1192_v6, %v352_v21  ;;  %v376_v26 = vpack.c.bf16 %v1192_v6, %v374_v22  ;;  %s1086_s11 = scalar_lea.vmem %s1085_s9, 32  ;;  %p1087_p1 = scmp.lt.s32.totalorder %s762_s20, %s1085_s9 }
  0x26   : > { %v396_v27 = vsel %vm308_vm0, %v390_v15, %v1240_v1  ;;  %v418_v28 = vsel %vm308_vm0, %v412_v16, %v1240_v1  ;;  %v440_v29 = vsel %vm308_vm0, %v434_v17, %v1240_v1  ;;  %v462_v30 = vsel %vm308_vm0, %v456_v18, %v1240_v1  ;;  %p1083_p0 = pneg %p1082_p13  ;;  %p1088_p2 = scmp.lt.s32.totalorder %s1086_s11, %s1080_s25 }
  0x27   : > { %312 = vst [vmem:[#allocation12] sm:$0xf] %v310_v23  ;;  %334 = vst [vmem:[#allocation12 + $0x4] sm:$0xf] %v332_v24  ;;  %v398_v31 = vpack.c.bf16 %v1192_v6, %v396_v27  ;;  %v420_v32 = vpack.c.bf16 %v1192_v6, %v418_v28  ;;  %v442_v33 = vpack.c.bf16 %v1192_v6, %v440_v29  ;;  %979 = vmatpush3.bf16.msra.mxu1 %v978_v48 }
  0x28   : > { %356 = vst [vmem:[#allocation12 + $0x8] sm:$0xf] %v354_v25  ;;  %378 = vst [vmem:[#allocation12 + $0xc] sm:$0xf] %v376_v26  ;;  %v464_v34 = vpack.c.bf16 %v1192_v6, %v462_v30  ;;  %980 = vmatprep.subr.bf16.mxu1 %v1193_v42  ;;  %v993_v63 = vpack.c.bf16 %v671_v62, %v670_v60  ;;  %v634_v62 = vld [vmem:[#allocation2] sm:$0x1]  ;;  %p1089_p3 = por %p1088_p2, %p1087_p1 }
  0x29   : > { %400 = vst [vmem:[#allocation12 + $0x10] sm:$0xf] %v398_v31  ;;  %422 = vst [vmem:[#allocation12 + $0x14] sm:$0xf] %v420_v32 }
  0x2a   : > { %444 = vst [vmem:[#allocation12 + $0x18] sm:$0xf] %v442_v33  ;;  %466 = vst [vmem:[#allocation12 + $0x1c] sm:$0xf] %v464_v34  ;;  %p1090_p5 = pnand %p1089_p3, %p1083_p0 }
  0x2b   : > { %982 = vmatpush3.bf16.msra.mxu1 %v981_v51 }
  0x2c   : > { %983 = vmatprep.subr.bf16.mxu1 %v1193_v42 }
  0x2e   : > { %v1060_v35 = vld [vmem:[#allocation12] sm:$0xff]  }
  0x2f   : > { %v1061_v36 = vld [vmem:[#allocation12 + $0x8] sm:$0xff]   ;;  %928 = vmatprep.mubr.msk.bf16.mxu0 %vm524_vm1, %v1060_v35  ;;  %985 = vmatpush3.bf16.msra.mxu1 %v984_v54 }
  0x30   : > { %v1062_v37 = vld [vmem:[#allocation12 + $0x10] sm:$0xff]   ;;  %929 = vmatmul.mubr.msk.bf16.vlgmr.msra.gmra.mrb[0].mxu0 %vm524_vm1, %v1061_v36  ;;  %986 = vmatprep.subr.bf16.mxu1 %v1193_v42 }
  0x31   : > { %932 = vmatprep.mubr.msk.bf16.mxu0 %vm524_vm1, %v1062_v37  ;;  %v1063_v38 = vld [vmem:[#allocation12 + $0x18] sm:$0xff]  }
  0x33   : > { %988 = vmatpush3.bf16.msra.mxu1 %v987_v57 }
  0x34   : > { %989 = vmatprep.subr.bf16.mxu1 %v1193_v42 }
  0x37   : > { %991 = vmatpush3.bf16.msra.mxu1 %v990_v61 }
  0x38   : > { %933 = vmatmul.mubr.msk.bf16.gmra.mrb[4].mxu0 %vm524_vm1, %v1063_v38  ;;  %992 = vmatprep.subr.bf16.mxu1 %v1193_v42 }
  0x3b   : > { %994 = vmatpush3.bf16.msra.mxu1 %v993_v63 }
 0x103   : > { %v930_v2 = vpop.f32.mrb[0].mxu0 }
 0x104   : > { %v580_v3 = vadd.f32 %v930_v2, %v885_v0  ;;  %v571_v4 = vpop.f32.mrb[1].mxu0 }
 0x105   : > { %v572_v5 = vadd.f32 %v885_v0, %v571_v4  ;;  %v931_v7 = vpop.f32.mrb[2].mxu0 }
 0x106   : > { %v604_v8 = vmul.f32 0.5, %v580_v3  ;;  %v583_v9 = vadd.f32 %v931_v7, %v885_v0  ;;  %v574_v10 = vpop.f32.mrb[3].mxu0 }
 0x107   : > { %v602_v11 = vmul.f32 0.5, %v572_v5  ;;  %v575_v12 = vadd.f32 %v885_v0, %v574_v10 }
 0x108   : > { %1064 = vtanh.f32 %v604_v8  ;;  %v605_v6 = vmul.f32 0.5, %v583_v9 }
 0x109   : > { %1066 = vtanh.f32 %v602_v11  ;;  %v603_v13 = vmul.f32 0.5, %v575_v12 }
 0x10a   : > { %1068 = vtanh.f32 %v605_v6 }
 0x10b   : > { %1070 = vtanh.f32 %v603_v13  ;;  %v934_v14 = vpop.f32.mrb[4].mxu0 }
 0x10c   : > { %v596_v15 = vadd.f32 %v934_v14, %v885_v0  ;;  %v587_v16 = vpop.f32.mrb[5].mxu0 }
 0x10d   : > { %v588_v17 = vadd.f32 %v885_v0, %v587_v16  ;;  %v935_v18 = vpop.f32.mrb[6].mxu0 }
 0x10e   : > { %v608_v19 = vmul.f32 0.5, %v596_v15  ;;  %v599_v20 = vadd.f32 %v935_v18, %v885_v0  ;;  %v590_v21 = vpop.f32.mrb[7].mxu0 }
 0x10f   : > { %v606_v22 = vmul.f32 0.5, %v588_v17  ;;  %v591_v23 = vadd.f32 %v885_v0, %v590_v21 }
 0x110   : > { %1072 = vtanh.f32 %v608_v19  ;;  %v609_v24 = vmul.f32 0.5, %v599_v20 }
 0x111   : > { %1074 = vtanh.f32 %v606_v22  ;;  %v607_v25 = vmul.f32 0.5, %v591_v23 }
 0x112   : > { %v1065_v26 = vpop.eup %1064  ;;  %1076 = vtanh.f32 %v609_v24 }
 0x113   : > { %v1067_v27 = vpop.eup %1066  ;;  %1078 = vtanh.f32 %v607_v25  ;;  %v620_v31 = vadd.f32 1.0, %v1065_v26 }
 0x114   : > { %v1069_v28 = vpop.eup %1068  ;;  %v618_v29 = vadd.f32 1.0, %v1067_v27 }
 0x115   : > { %v1071_v30 = vpop.eup %1070  ;;  %v621_v34 = vadd.f32 1.0, %v1069_v28  ;;  %v628_v37 = vmul.f32 %v620_v31, %v604_v8 }
 0x116   : > { %v619_v32 = vadd.f32 1.0, %v1071_v30  ;;  %v626_v33 = vmul.f32 %v618_v29, %v602_v11 }
 0x117   : > { %v629_v41 = vmul.f32 %v621_v34, %v605_v6 }
 0x118   : > { %v627_v35 = vmul.f32 %v619_v32, %v603_v13 }
 0x11a   : > { %v1073_v36 = vpop.eup %1072  ;;  %v635_v38 = vadd.f32 %v627_v35, %v626_v33 }
 0x11b   : > { %v1075_v39 = vpop.eup %1074  ;;  %v624_v45 = vadd.f32 1.0, %v1073_v36 }
 0x11c   : > { %v1077_v40 = vpop.eup %1076  ;;  %v636_v42 = vadd.f32 %v635_v38, %v628_v37  ;;  %v622_v43 = vadd.f32 1.0, %v1075_v39 }
 0x11d   : > { %v1079_v44 = vpop.eup %1078  ;;  %v625_v50 = vadd.f32 1.0, %v1077_v40  ;;  %v632_v52 = vmul.f32 %v624_v45, %v608_v19 }
 0x11e   : > { %v630_v46 = vmul.f32 %v622_v43, %v606_v22  ;;  %v637_v47 = vadd.f32 %v636_v42, %v629_v41  ;;  %v623_v48 = vadd.f32 1.0, %v1079_v44 }
 0x11f   : > { %v633_v54 = vmul.f32 %v625_v50, %v609_v24 }
 0x120   : > { %v638_v49 = vadd.f32 %v637_v47, %v630_v46  ;;  %v631_v51 = vmul.f32 %v623_v48, %v607_v25 }
 0x122   : > { %v639_v53 = vadd.f32 %v638_v49, %v631_v51 }
 0x124   : > { %v640_v55 = vadd.f32 %v639_v53, %v632_v52 }
 0x126   : > { %v641_v56 = vadd.f32 %v640_v55, %v633_v54 }
 0x128   : > { %v642_v57 = vrot.slane %v641_v56, 4 }
 0x12a   : > { %v643_v58 = vadd.f32 %v642_v57, %v641_v56 }
 0x12c   : > { %v644_v59 = vrot.slane %v643_v58, 2 }
 0x12e   : > { %v645_v60 = vadd.f32 %v644_v59, %v643_v58 }
 0x130   : > { %v646_v61 = vrot.slane %v645_v60, 1 }
 0x132   : > { %v647_v63 = vadd.f32 %v646_v61, %v645_v60 }
 0x134   : > { %v648_v0 = vadd.f32 %v647_v63, %v634_v62 }
 0x136   : > { %649 = vst [vmem:[#allocation2] sm:$0x1] %v648_v0 }
 0x13d   : > { %v653_v2 = vld [vmem:[#allocation2] sm:$0x1] }
 0x13e   : > { %v654_v3 = vmul.f32 0.015625, %v653_v2 }
 0x140   : > { %969 = vmatmul.mubr.f32.vlgmr.msra.gmra.mrb[0].mxu1 %v654_v3  ;;  %655 = vst [vmem:[%s276_s18] sm:$0x1] %v654_v3 }
 0x141   : > { %1093 = shalt.err (!%p1090_p5)
}
 0x142   : > { %s1094_s13 = scalar_lea.hbm %s1395_s23, 16  ;;  %s1098_s21 = scalar_lea.hbm %s1478_s6, 32 }
 0x143   : > { %p1095_p6 = scmp.ne.s32.totalorder %s1395_s23, %s1094_s13  ;;  %p1099_p10 = scmp.lt.u32.totalorder %s1395_s23, %s1478_s6 }
 0x144   : > { %p1100_p11 = scmp.lt.u32.totalorder %s1098_s21, %s1094_s13  ;;  %p1102_p13 = scmp.lt.u32.totalorder %s1094_s13, %s1395_s23 }
 0x145   : > { %p1096_p7 = pnand %p1095_p6, %p1282_p4 }
 0x146   : > { %p1101_p12 = por %p1100_p11, %p1099_p10 }
 0x147   : > { %p1097_p9 = pneg %p1096_p7 }
 0x148   : > { %p1103_p0 = por %p1102_p13, %p1101_p12 }
 0x14a   : > { %p1104_p1 = pnand %p1103_p0, %p1097_p9 }
 0x14c   : > { %1107 = shalt.err (!%p1104_p1)
}
 0x14d   : > { %995 = dma.vmem_to_hbm [thread:$0]  (%p1282_p4), %s762_s20, 16, %s1395_s23, %s745_s24   ;;  %v672_v4 = vld [vmem:[%s1475_s3] sm:$0x1] }
 0x14e   : > { %s282_s11 = scalar_lea.vmem [#allocation10], %s1386_s17  ;;  %s1424_s21 = scalar_lea.hbm %s1479_s7, %s896_s19 }
 0x14f   : > { %s774_s16 = sshll.u32 %s282_s11, 4  ;;  %s749_s20 = scalar_lea.sflag [#allocation11], %s1386_s17  ;;  %s1426_s16 = int_to_ptr.vmem [resolvable:$true] %s774_s16 }
 0x150   : > { %s1108_s23 = scalar_lea.vmem %s1426_s16, 16  ;;  %s1196_s24 = smov [#allocation10]  }
 0x151   : > { %p1109_p2 = scmp.ne.s32.totalorder %s1426_s16, %s1108_s23  ;;  %s1112_s22 = sshll.u32 %s1196_s24, 4  ;;  %s1113_s22 = int_to_ptr.vmem [resolvable:$false] %s1112_s22 }
 0x152   : > { %s1114_s29 = scalar_lea.vmem %s1113_s22, 32  ;;  %p1115_p6 = scmp.lt.s32.totalorder %s1426_s16, %s1113_s22 }
 0x153   : > { %p1110_p3 = pnand %p1109_p2, %p1282_p4  ;;  %p1116_p7 = scmp.lt.s32.totalorder %s1114_s29, %s1108_s23 }
 0x155   : > { %p1111_p5 = pneg %p1110_p3  ;;  %p1117_p9 = por %p1116_p7, %p1115_p6 }
 0x157   : > { %p1118_p10 = pnand %p1117_p9, %p1111_p5 }
 0x213   : > { %v739_v5 = vpop.f32.mrb[0].mxu1 }
 0x214   : > { %v740_v7 = vadd.f32 %v739_v5, %v672_v4  ;;  %v970_v8 = vpop.f32.mrb[1].mxu1 }
 0x216   : > { %743 = vst [vmem:[%s282_s11] sm:$0x1] %v740_v7 }
 0x217   : > { %1121 = shalt.err (!%p1118_p10)
}
 0x218   : > { %s1122_s17 = scalar_lea.hbm %s1424_s21, 16  ;;  %s1126_s25 = scalar_lea.hbm %s1479_s7, 32 }
 0x219   : > { %p1123_p11 = scmp.ne.s32.totalorder %s1424_s21, %s1122_s17  ;;  %p1127_p0 = scmp.lt.u32.totalorder %s1424_s21, %s1479_s7 }
 0x21a   : > { %p1128_p1 = scmp.lt.u32.totalorder %s1126_s25, %s1122_s17  ;;  %p1130_p3 = scmp.lt.u32.totalorder %s1122_s17, %s1424_s21 }
 0x21b   : > { %p1124_p12 = pnand %p1123_p11, %p1282_p4 }
 0x21c   : > { %p1129_p2 = por %p1128_p1, %p1127_p0 }
 0x21d   : > { %p1125_p13 = pneg %p1124_p12 }
 0x21e   : > { %p1131_p5 = por %p1130_p3, %p1129_p2 }
 0x220   : > { %p1132_p6 = pnand %p1131_p5, %p1125_p13 }
 0x222   : > { %1135 = shalt.err (!%p1132_p6)
}
 0x223   : > { %996 = dma.vmem_to_hbm [thread:$0]  (%p1282_p4), %s1426_s16, 16, %s1424_s21, %s749_s20  }
 0x224 PF: > { %p1006_p7 = scmp.ge.s32.totalorder %s1190_s8, 2  ;;  %s786_s13 = sand.u32 1, %s1170_s26  }
 0x225   : > { %s787_s18 = scalar_lea.sflag [#allocation9], %s786_s13 }
 0x226   : > { %p1000_p9 = pnand %p1006_p7, %p1289_p8 }
 0x228   : > { %1161 = dma.done.wait (!%p1000_p9), %s787_s18, 16  }
 0x229   : > { %1163 = vsyncadd (!%p1000_p9), %s787_s18, 4294967280  ;;  %s795_s23 = scalar_lea.sflag [#allocation11], %s786_s13 }
 0x22a   : > { %1165 = dma.done.wait (!%p1000_p9), %s795_s23, 16  }
 0x22b   : > { %1167 = vsyncadd (!%p1000_p9), %s795_s23, 4294967280  ;;  %s29_s8 = sadd.s32 1, %s1190_s8   ;;  %s1482_s26 = smov %s1174_s27 }
 0x22c   : > { %p26_p10 = scmp.ge.s32.totalorder %s29_s8, 4   ;;  %s1483_s27 = smov %s1178_s28 }
 0x22d   : > { %s1484_s28 = smov %s1295_s15  ;;  %s1485_s29 = smov %s1186_s30 }
 0x22e   : > { %s1486_s30 = smov %s1488_s10  ;;  %28 = sbr.rel (!%p26_p10) target bundleno = 9 (0x9), region = 114 }
 0x235   :  { %799 = vsyncpa [#allocation9], 1 }
 0x236   :  { %801 = vsyncpa [#allocation9 + $0x1], 1 }
 0x237   :  { %802 = vsyncpa [#allocation11], 1 }
 0x238   :  { %804 = vsyncpa [#allocation11 + $0x1], 1 }

</bundles_post_ra>
